<compile_context>
chip_gen: v7x
topology: tpu7x:2x2x1
jax: 0.10.0
libtpu: 0.0.40
codegen_flags: <defaults>
</compile_context>

<pallas_src>
import math

import jax
import jax.numpy as jnp
from jax.experimental import pallas as pl
from jax.experimental.pallas import tpu as pltpu


_SMALL_BYTES = 1 << 20      # below this, plain JAX beats kernel-launch overhead
_FOLD_CAP = 8192            # max folded (packed) row width
_LANE_TILE_CAP = 2048       # max lane width of a single tile (multiple of 128)
_TILE_BYTES = 8 << 20       # target bytes per x/out tile (double-buffered)


def _round_up(a, b):
    return (a + b - 1) // b * b


def _vmem_budget():
    """(target_tile_bytes, vmem_limit_cap) tuned per TPU generation."""
    vmem = None
    try:
        info = pltpu.get_tpu_info()
        vmem = getattr(info, "vmem_capacity_bytes", None)
    except Exception:
        vmem = None
    if vmem is None:
        return _TILE_BYTES, 48 << 20       # conservative: safe on every part
    if vmem <= (64 << 20):                 # v7x-class TC: 64 MiB physical VMEM
        return _TILE_BYTES, 56 << 20
    return _TILE_BYTES, 96 << 20           # v5e / v6e: 128 MiB physical VMEM


def _prenorm_kernel(x_ref, shift_ref, scale_ref, o_ref):
    # x_ref/o_ref: (tm, tn); shift_ref/scale_ref: (1, tn) float32.
    # Compute in f32 (VPU has huge slack in a memory-bound kernel), cast on store.
    x = x_ref[...].astype(jnp.float32)
    o_ref[...] = ((x + shift_ref[...]) * scale_ref[...]).astype(o_ref.dtype)


def _prenorm_ref(x, shift_f32, scale_f32):
    y = (x.astype(jnp.float32) + shift_f32) * scale_f32
    return y.astype(x.dtype)


def prenorm_forward(x, shift=None, scale=None):
    """PreNormLayer forward (eval mode): (x + shift) * scale over the last axis."""
    if shift is not None:
        n_units = shift.shape[0]
    elif scale is not None:
        n_units = scale.shape[0]
    else:
        n_units = x.shape[-1]
    assert n_units == 1 or x.shape[-1] == n_units, (
        f"Expected input dimension of size {n_units}, got {x.shape[-1]}.")

    dtype = x.dtype
    itemsize = jnp.dtype(dtype).itemsize
    orig_shape = x.shape
    total = math.prod(orig_shape)

    # Buffers held in float32 (mirrors the PyTorch module's f32 buffers).
    shift_f = (jnp.zeros((n_units,), jnp.float32) if shift is None
               else shift.astype(jnp.float32))
    scale_f = (jnp.ones((n_units,), jnp.float32) if scale is None
               else scale.astype(jnp.float32))

    # ---- small-input bailout: launch + repack overhead dominates tiny tensors.
    if total == 0 or total * itemsize < _SMALL_BYTES:
        return _prenorm_ref(x, shift_f, scale_f)

    tile_bytes_target, vmem_cap = _vmem_budget()

    # ---- lane-dense layout: fold `rep` consecutive feature vectors per packed
    #      row of width L.  Only exact folds are used, so the reshape is a free
    #      contiguous view — never a padding pass.
    n_vecs = total // n_units
    rep = 1
    if n_units % 128 != 0:
        rep_min = 128 // math.gcd(n_units, 128)
        best = None
        # Prefer a fold that makes L a multiple of 128 (unmasked full-vreg vst).
        r = rep_min
        while r * n_units <= _FOLD_CAP:
            if n_vecs % r == 0:
                best = r
                break
            r += rep_min
        if best is None:
            # Largest exact partial fold: shrinks the masked-lane fraction.
            for r in range(min(_FOLD_CAP // n_units, n_vecs), 1, -1):
                if n_vecs % r == 0:
                    best = r
                    break
        if best is not None:
            rep = best
    L = rep * n_units
    rows = total // L

    # ---- lane-axis tile: multiple of 128 (ragged edge allowed) or the full dim.
    if L % 128 == 0:
        tn = min(L, _LANE_TILE_CAP)
    else:
        tn = L  # last block dim must be 128-divisible or equal the full dim
    grid_j = pl.cdiv(L, tn)

    # ---- row-axis tile: VMEM budget, balanced across a >=2-step parallel grid.
    sub = max(8, 32 // itemsize)                 # sublane multiple: 8/16/32
    row_bytes = tn * itemsize
    tm_budget = max(sub, (tile_bytes_target // row_bytes) // sub * sub)

    # Guard: the smallest legal tile must fit the VMEM budget (very wide,
    # non-128-multiple feature dims could otherwise OOM / fail to compile).
    if 4 * sub * row_bytes + (8 << 20) > vmem_cap:
        return _prenorm_ref(x, shift_f, scale_f)

    n_i = pl.cdiv(rows, tm_budget)
    # Guarantee >= 2 grid steps so both v7x TensorCores get work (neutral on
    # single-TC v5e/v6e).
    if n_i * grid_j < 2 and rows > sub:
        n_i = 2
    # Balance the row blocks: the ragged tail is < one block, no wrapper padding.
    tm = min(tm_budget, _round_up(pl.cdiv(rows, n_i), sub))
    grid_i = pl.cdiv(rows, tm)

    x2d = x.reshape(rows, L)                                  # contiguous: free
    shift2d = (jnp.tile(shift_f, rep) if rep > 1 else shift_f).reshape(1, L)
    scale2d = (jnp.tile(scale_f, rep) if rep > 1 else scale_f).reshape(1, L)

    tile_bytes = tm * tn * itemsize
    vmem_limit = int(min(max(4 * tile_bytes + 16 * tn * 4 + (8 << 20), 16 << 20),
                         vmem_cap))

    out2d = pl.pallas_call(
        _prenorm_kernel,
        out_shape=jax.ShapeDtypeStruct((rows, L), dtype),
        grid_spec=pl.GridSpec(
            grid=(grid_i, grid_j),
            in_specs=[
                pl.BlockSpec((tm, tn), lambda i, j: (i, j)),
                pl.BlockSpec((1, tn), lambda i, j: (0, j)),
                pl.BlockSpec((1, tn), lambda i, j: (0, j)),
            ],
            out_specs=pl.BlockSpec((tm, tn), lambda i, j: (i, j)),
        ),
        compiler_params=pltpu.CompilerParams(
            dimension_semantics=("parallel", "parallel"),
            vmem_limit_bytes=vmem_limit,
        ),
    )(x2d, shift2d, scale2d)

    return out2d.reshape(orig_shape)


if __name__ == "__main__":
    key = jax.random.PRNGKey(0)
    ks = jax.random.split(key, 8)

    def check(x, shift, scale):
        out = jax.block_until_ready(prenorm_forward(x, shift, scale))
        ref = ((x.astype(jnp.float32) + shift) * scale).astype(x.dtype)
        assert out.shape == x.shape and out.dtype == x.dtype
        assert jnp.allclose(out, ref, atol=1e-5, rtol=1e-5), "mismatch vs reference"

    # 1) Tiny module-scale case (batch=2, seq=8, hidden=32) -> plain-JAX fast path.
    n_units = 32
    x = jax.random.normal(ks[0], (2, 8, n_units), dtype=jnp.float32)
    shift = jax.random.normal(ks[1], (n_units,), dtype=jnp.float32)
    scale = jax.random.uniform(ks[2], (n_units,), dtype=jnp.float32) + 0.5
    check(x, shift, scale)

    # 2) Pallas path: narrow feature dim folded lane-dense (32 -> 128 lanes),
    #    balanced 2-step parallel grid with a ragged (masked) last row block.
    x = jax.random.normal(ks[3], (9, 1000, n_units), dtype=jnp.float32)
    check(x, shift, scale)

    # 3) Pallas path: feature dim already a multiple of 128.
    n_units = 256
    shift = jax.random.normal(ks[4], (n_units,), dtype=jnp.float32)
    scale = jax.random.uniform(ks[5], (n_units,), dtype=jnp.float32) + 0.5
    x = jax.random.normal(ks[6], (32, 64, n_units), dtype=jnp.float32)
    check(x, shift, scale)

    # 4) Pallas path: awkward width (100) — partial exact fold, no padding pass.
    n_units = 100
    shift = jax.random.normal(ks[7], (n_units,), dtype=jnp.float32)
    scale = jax.random.uniform(ks[2], (n_units,), dtype=jnp.float32) + 0.5
    x = jax.random.normal(ks[1], (85, 37, n_units), dtype=jnp.float32)
    check(x, shift, scale)

    # TODO(synk): pre-training mode (waiting_updates / update_stats /
    # stop_updates / PreNormException) is host-side stateful logic and is
    # intentionally not part of the forward kernel.

    print("KERNEL_OK")
</pallas_src>

<mosaic_0001>
module attributes {stable_mosaic.version = 11 : i64} {
  func.func @_prenorm_kernel(%arg0: i32, %arg1: i32, %arg2: memref<1128x128xf32, #tpu.memory_space<vmem>>, %arg3: memref<1x128xf32, #tpu.memory_space<vmem>>, %arg4: memref<1x128xf32, #tpu.memory_space<vmem>>, %arg5: memref<1128x128xf32, #tpu.memory_space<vmem>>) attributes {dimension_semantics = [#tpu.dimension_semantics<parallel>, #tpu.dimension_semantics<parallel>], iteration_bounds = array<i64: 2, 1>, scalar_prefetch = 0 : i64, scratch_operands = 0 : i64, tpu.core_type = #tpu.core_type<tc>, window_params = [{transform_indices = @transform_0, window_bounds = array<i64: 1128, 128>}, {transform_indices = @transform_1, window_bounds = array<i64: 1, 128>}, {transform_indices = @transform_2, window_bounds = array<i64: 1, 128>}, {transform_indices = @transform_3, window_bounds = array<i64: 1128, 128>}]} {
    %c0 = arith.constant 0 : index
    %c0_0 = arith.constant 0 : index
    %0 = vector.load %arg2[%c0, %c0_0] : memref<1128x128xf32, #tpu.memory_space<vmem>>, vector<1128x128xf32>
    %c0_1 = arith.constant 0 : index
    %c0_2 = arith.constant 0 : index
    %1 = vector.load %arg3[%c0_1, %c0_2] : memref<1x128xf32, #tpu.memory_space<vmem>>, vector<1x128xf32>
    %2 = vector.broadcast %1 : vector<1x128xf32> to vector<1128x128xf32>
    %3 = arith.addf %0, %2 : vector<1128x128xf32>
    %c0_3 = arith.constant 0 : index
    %c0_4 = arith.constant 0 : index
    %4 = vector.load %arg4[%c0_3, %c0_4] : memref<1x128xf32, #tpu.memory_space<vmem>>, vector<1x128xf32>
    %5 = vector.broadcast %4 : vector<1x128xf32> to vector<1128x128xf32>
    %6 = arith.mulf %3, %5 : vector<1128x128xf32>
    %c0_5 = arith.constant 0 : index
    %c0_6 = arith.constant 0 : index
    %7 = vector.load %arg5[%c0_5, %c0_6] : memref<1128x128xf32, #tpu.memory_space<vmem>>, vector<1128x128xf32>
    tpu.vector_store %arg5[%c0_5, %c0_6], %6 {strides = array<i32>} : memref<1128x128xf32, #tpu.memory_space<vmem>>, vector<1128x128xf32>,
    return
  }
  func.func @transform_0(%arg0: i32, %arg1: i32) -> (i32, i32) {
    %c0_i32 = arith.constant 0 : i32
    return %arg0, %arg1 : i32, i32
  }
  func.func @transform_1(%arg0: i32, %arg1: i32) -> (i32, i32) {
    %c0_i32 = arith.constant 0 : i32
    %c0_i32_0 = arith.constant 0 : i32
    return %c0_i32, %arg1 : i32, i32
  }
  func.func @transform_2(%arg0: i32, %arg1: i32) -> (i32, i32) {
    %c0_i32 = arith.constant 0 : i32
    %c0_i32_0 = arith.constant 0 : i32
    return %c0_i32, %arg1 : i32, i32
  }
  func.func @transform_3(%arg0: i32, %arg1: i32) -> (i32, i32) {
    %c0_i32 = arith.constant 0 : i32
    return %arg0, %arg1 : i32, i32
  }
}

</mosaic_0001>

<bundles_post_ra>
// kernel: tpu_custom_call.1
= control target key start
LH: loop header
LB: loop body
LE: loop exit
PB: predicated region body
PF: predicated region fallthrough
CT: control target
= control target key end

     0   :  { %8 = vsyncpa [#allocation3], 0  ;;  %s2057_s0 = inlined_call_operand.hbm [shape: f32[2250,128], index: 0, kind: input, shape index: {}]   ;;  %s2058_s1 = inlined_call_operand.hbm [shape: f32[1,128], index: 1, kind: input, shape index: {}]   ;;  %s2059_s2 = inlined_call_operand.hbm [shape: f32[1,128], index: 2, kind: input, shape index: {}]   ;;  %s2060_s3 = inlined_call_operand.hbm [shape: f32[2250,128], index: 3, kind: output, shape index: {}]  }
   0x1   :  { %10 = vsyncpa [#allocation3 + $0x1], 0 }
   0x2   :  { %11 = vsyncpa [#allocation6], 0 }
   0x3   :  { %12 = vsyncpa [#allocation4], 0 }
   0x4   :  { %14 = vsyncpa [#allocation4 + $0x1], 0  ;;  %s1258_s12 = smov 0   ;;  %s1260_s13 = smov 0  }
   0x5   :  { %s1262_s14 = smov 0   ;;  %s1264_s15 = smov 0  }
   0x6   :  { %s1266_s16 = smov 0   ;;  %s1268_s17 = smov 0  }
   0x7 LB: > { %s948_s18 = sadd.s32 4294967295, %s1228_s17   ;;  %s949_s19 = sadd.s32 4294967294, %s1228_s17   ;;  %s1228_s17 = sphi %s1268_s17, %s20_s17   ;;  %s1224_s16 = sphi %s1266_s16, %s2086_s16   ;;  %s1220_s15 = sphi %s1264_s15, %s2085_s15   ;;  %s1216_s14 = sphi %s1262_s14, %s2084_s14   ;;  %s1212_s13 = sphi %s1260_s13, %s2083_s13   ;;  %s1208_s12 = sphi %s1258_s12, %s2082_s12  }
   0x8   : > { %s41_s20 = sadd.s32 1, %s1216_s14  ;;  %p48_p0 = scmp.ne.s32.totalorder %s1216_s14, %s1212_s13 }
   0x9   : > { %p49_p1 = scmp.eq.s32.totalorder %s1228_s17, 0  ;;  %p54_p2 = scmp.ne.s32.totalorder %s1212_s13, %s1208_s12 }
   0xa   : > { %p1296_p3 = scmp.eq.s32.totalorder %s948_s18, 0  ;;  %p132_p4 = scmp.eq.s32.totalorder %s948_s18, 1 }
   0xb   : > { %p1300_p5 = por %p49_p1, %p48_p0  ;;  %p138_p6 = scmp.eq.s32.totalorder %s949_s19, 1 }
   0xc   : > { %s2067_s21 = scalar_select %p1296_p3, 1, 0 }
   0xd   : > { %p1306_p7 = por %p1296_p3, %p54_p2  ;;  %p1310_p8 = por %p132_p4, %p48_p0 }
   0xe   : > { %p1314_p9 = por %p138_p6, %p54_p2  ;;  %p950_p10 = scmp.ge.s32.totalorder %s1228_s17, 1 }
   0xf   : > { %s2069_s23 = scalar_select %p1306_p7, 1, 0 }
  0x10   : > { %s2070_s24 = scalar_select %p1310_p8, 1, 0 }
  0x11   : > { %s2071_s25 = scalar_select %p1314_p9, 1, 0 }
  0x12   : > { %p145_p11 = scmp.lt.s32.totalorder %s1228_s17, 3  ;;  %s1230_s27 = smov [#allocation5]  }
  0x13   : > { %s160_s28 = sshll.u32 %s1230_s27, 4  ;;  %p996_p1 = scmp.lt.s32.totalorder %s1228_s17, 2  ;;  %s161_s28 = int_to_ptr.vmem [resolvable:$true] %s160_s28 }
  0x14   : > { %p1321_p13 = pnand %p950_p10, %p145_p11  ;;  %s1231_s30 = smov [#allocation7]  }
  0x15   : > { %p1330_p4 = pnand %p996_p1, %p1300_p5  ;;  %s173_s4 = sshll.u32 %s1231_s30, 4  ;;  %s1340_s4 = int_to_ptr.vmem [resolvable:$true] %s173_s4 }
  0x16   : > { %s2072_s26 = scalar_select %p1321_p13, 1, 0 }
  0x17   : > { %p979_p0 = pneg %p1321_p13  ;;  %s1056_s8 = scalar_lea.hbm %s2058_s1, 16 }
  0x18   : > { %s2073_s29 = scalar_select %p1330_p4, 1, 0 }
  0x19   : > { %p1336_p2 = pnand %p979_p0, %p1296_p3  ;;  %p1057_p5 = scmp.ne.s32.totalorder %s2058_s1, %s1056_s8 }
  0x1a   : > { %p1063_p1 = scmp.lt.u32.totalorder %s1056_s8, %s2058_s1 }
  0x1b   : > { %p1058_p6 = pneg %p1336_p2 }
  0x1d   : > { %p1059_p10 = pnand %p1058_p6, %p1057_p5 }
  0x1f   : > { %p1060_p11 = pneg %p1059_p10 }
  0x21   : > { %p1065_p0 = pnand %p1063_p1, %p1060_p11 }
  0x23   : > { %1068 = shalt.err (!%p1065_p0)
}
  0x24   : > { %s1069_s19 = scalar_lea.vmem %s161_s28, 16  ;;  %s1076_s22 = scalar_lea.vmem %s161_s28, 32 }
  0x25   : > { %p1070_p12 = scmp.ne.s32.totalorder %s161_s28, %s1069_s19  ;;  %p1077_p3 = scmp.lt.s32.totalorder %s161_s28, %s161_s28 }
  0x26   : > { %p1078_p7 = scmp.lt.s32.totalorder %s1076_s22, %s1069_s19 }
  0x27   : > { %p1072_p9 = pnand %p1070_p12, %p1058_p6 }
  0x28   : > { %p1079_p13 = por %p1078_p7, %p1077_p3 }
  0x29   : > { %p1073_p8 = pneg %p1072_p9 }
  0x2b   : > { %p1080_p4 = pnand %p1079_p13, %p1073_p8 }
  0x2d   : > { %1083 = shalt.err (!%p1080_p4)
}
  0x2e   : > { %982 = dma.hbm_to_vmem [thread:$0]  (!%p1336_p2), %s2058_s1, 16, %s161_s28, [#allocation6]  }
  0x2f   : > { %s1084_s8 = scalar_lea.hbm %s2059_s2, 16 }
  0x30   : > { %p1085_p9 = scmp.ne.s32.totalorder %s2059_s2, %s1084_s8  ;;  %p1091_p8 = scmp.lt.u32.totalorder %s1084_s8, %s2059_s2 }
  0x32   : > { %p1087_p3 = pnand %p1085_p9, %p1058_p6 }
  0x34   : > { %p1088_p7 = pneg %p1087_p3 }
  0x36   : > { %p1093_p12 = pnand %p1091_p8, %p1088_p7 }
  0x38   : > { %1096 = shalt.err (!%p1093_p12)
}
  0x39   : > { %s1097_s28 = scalar_lea.vmem %s1340_s4, 16  ;;  %s1104_s19 = scalar_lea.vmem %s1340_s4, 32 }
  0x3a   : > { %p1098_p13 = scmp.ne.s32.totalorder %s1340_s4, %s1097_s28  ;;  %p1105_p10 = scmp.lt.s32.totalorder %s1340_s4, %s1340_s4 }
  0x3b   : > { %p1106_p11 = scmp.lt.s32.totalorder %s1104_s19, %s1097_s28 }
  0x3c   : > { %p1100_p4 = pnand %p1098_p13, %p1058_p6 }
  0x3d   : > { %p1107_p1 = por %p1106_p11, %p1105_p10 }
  0x3e   : > { %p1101_p5 = pneg %p1100_p4 }
  0x40   : > { %p1108_p0 = pnand %p1107_p1, %p1101_p5 }
  0x42   : > { %1111 = shalt.err (!%p1108_p0)
}
  0x43   : > { %985 = dma.hbm_to_vmem [thread:$0]  (!%p1336_p2), %s2059_s2, 16, %s1340_s4, [#allocation6]  }
  0x44   : > { %s32_s30 = sadd.s32 1, %s1224_s16  ;;  %s184_s6 = sand.u32 1, %s1216_s14  }
  0x45   : > { %p34_p6 = scmp.ge.s32.totalorder %s32_s30, 2  ;;  %s965_s7 = smul.u32 1128, %s184_s6 }
  0x46   : > { %s963_s5 = smul.u32 18048, %s1224_s16  ;;  %s1409_s19 = scalar_lea.sflag [#allocation3], %s184_s6 }
  0x47   : > { %s2088_s30 = smov (%p34_p6, %s32_s30), 0  ;;  %s188_s9 = scalar_lea.vmem [#allocation2], %s965_s7 }
  0x48   : > { %s36_s8 = ssub.s32 %s1224_s16, %s2088_s30  ;;  %s196_s10 = sshll.u32 %s188_s9, 4  ;;  %s1402_s10 = int_to_ptr.vmem [resolvable:$true] %s196_s10 }
  0x49   : > { %p39_p9 = scmp.eq.s32.totalorder %s36_s8, 0  ;;  %s1400_s28 = scalar_lea.hbm %s2057_s0, %s963_s5 }
  0x4a   : > { %s1112_s22 = scalar_lea.hbm %s1400_s28, 18048  ;;  %p2075_p3 = scmp.ne.s32.totalorder %s2073_s29, 0 }
  0x4b   : > { %s1407_s4 = scalar_select %p39_p9, %s1216_s14, %s41_s20  }
  0x4c   : > { %p1113_p2 = scmp.ne.s32.totalorder %s1400_s28, %s1112_s22  ;;  %p1114_p7 = pneg %p2075_p3 }
  0x4d   : > { %s1117_s5 = scalar_lea.hbm %s2057_s0, 36096  ;;  %p1118_p13 = scmp.lt.u32.totalorder %s1400_s28, %s2057_s0 }
  0x4e   : > { %p1115_p8 = pnand %p1114_p7, %p1113_p2  ;;  %p1119_p4 = scmp.lt.u32.totalorder %s1117_s5, %s1112_s22 }
  0x4f   : > { %p1121_p10 = scmp.lt.u32.totalorder %s1112_s22, %s1400_s28 }
  0x50   : > { %p1116_p12 = pneg %p1115_p8  ;;  %p1120_p5 = por %p1119_p4, %p1118_p13 }
  0x52   : > { %p1122_p11 = por %p1121_p10, %p1120_p5 }
  0x54   : > { %p1123_p1 = pnand %p1122_p11, %p1116_p12 }
  0x56   : > { %1126 = shalt.err (!%p1123_p1)
}
  0x57   : > { %s1127_s20 = scalar_lea.vmem %s1402_s10, 18048  ;;  %s1232_s6 = smov [#allocation2]  }
  0x58   : > { %p1128_p0 = scmp.ne.s32.totalorder %s1402_s10, %s1127_s20  ;;  %s1132_s11 = sshll.u32 %s1232_s6, 4  ;;  %s1133_s11 = int_to_ptr.vmem [resolvable:$false] %s1132_s11 }
  0x59   : > { %s1134_s18 = scalar_lea.vmem %s1133_s11, 36096  ;;  %p1135_p2 = scmp.lt.s32.totalorder %s1402_s10, %s1133_s11 }
  0x5a   : > { %p1130_p6 = pnand %p1128_p0, %p1114_p7  ;;  %p1136_p8 = scmp.lt.s32.totalorder %s1134_s18, %s1127_s20 }
  0x5c   : > { %p1131_p9 = pneg %p1130_p6  ;;  %p1137_p13 = por %p1136_p8, %p1135_p2 }
  0x5e   : > { %p1138_p4 = pnand %p1137_p13, %p1131_p9 }
  0x60   : > { %1141 = shalt.err (!%p1138_p4)
}
  0x61   : > { %s1233_s22 = smov 128   ;;  %s1234_s27 = smov 8  }
  0x62   : > { %989 = dma.hbm_to_vmem [thread:$0]  (!%p2075_p3), %s1400_s28, 18048, %s1402_s10, %s1409_s19, %s1233_s22, %s1233_s22, %s1234_s27  }
  0x63   : > { %p2076_p7 = scmp.ne.s32.totalorder %s2072_s26, 0 }
  0x64   : > { %s1440_s7 = sand.u32 (!%p2076_p7), 1, %s1212_s13   ;;  %p2077_p12 = scmp.ne.s32.totalorder (!%p2076_p7), %s2069_s23, 0 }
  0x65   : > { %208 = sbr.rel (%p2076_p7) target bundleno = 215 (0xd7), region = 32  ;;  %s211_s8 = scalar_lea.sflag (!%p2076_p7), [#allocation3], %s1440_s7 }
  0x66   : > { %s966_s5 = smul.u32 (!%p2076_p7), 1128, %s1440_s7 }
  0x68   : > { %s1446_s9 = scalar_lea.vmem (!%p2076_p7), [#allocation2], %s966_s5 }
  0x6c   : > { %1195 = dma.done.wait (%p2077_p12), %s211_s8, 18048  }
  0x6d   : > { %1197 = vsyncadd (%p2077_p12), %s211_s8, 4294949248  ;;  %p2078_p3 = scmp.ne.s32.totalorder %s2067_s21, 0 }
  0x6f   : > { %1199 = dma.done.wait (%p2078_p3), [#allocation6], 32  }
  0x70   : > { %1201 = vsyncadd (%p2078_p3), [#allocation6], 4294967264  ;;  %v247_v0 = vld [vmem:[%s1446_s9] sm:$0xff]  ;;  %v1457_v1 = vld [vmem:[#allocation5] ss:$0 sm:$0xff]  ;;  %s1487_s21 = scalar_lea.vmem [#allocation8], %s966_s5 }
  0x71   : > { %v1459_v2 = vld [vmem:[#allocation7] ss:$0 sm:$0xff]  ;;  %v395_v3 = vadd.f32 %v1457_v1, %v247_v0  ;;  %v250_v6 = vld [vmem:[%s1446_s9 + $0x18] sm:$0xff]  ;;  %v251_v10 = vld [vmem:[%s1446_s9 + $0x20] sm:$0xff]  ;;  %s964_s23 = smul.u32 18048, %s1220_s15  ;;  %s840_s26 = sshll.u32 %s1487_s21, 4  ;;  %s1998_s26 = int_to_ptr.vmem [resolvable:$true] %s840_s26 }
  0x72   : > { %v248_v4 = vld [vmem:[%s1446_s9 + $0x8] sm:$0xff]  ;;  %v249_v5 = vld [vmem:[%s1446_s9 + $0x10] sm:$0xff]  ;;  %v398_v9 = vadd.f32 %v1457_v1, %v250_v6  ;;  %v399_v14 = vadd.f32 %v1457_v1, %v251_v10  ;;  %v254_v17 = vld [vmem:[%s1446_s9 + $0x38] sm:$0xff]  ;;  %s826_s28 = scalar_lea.sflag [#allocation4], %s1440_s7  ;;  %s1142_s19 = scalar_lea.vmem %s1998_s26, 18048 }
  0x73   : > { %v396_v7 = vadd.f32 %v1457_v1, %v248_v4  ;;  %v397_v8 = vadd.f32 %v1457_v1, %v249_v5  ;;  %v252_v11 = vld [vmem:[%s1446_s9 + $0x28] sm:$0xff]  ;;  %v253_v12 = vld [vmem:[%s1446_s9 + $0x30] sm:$0xff]  ;;  %v543_v13 = vmul.f32 %v1459_v2, %v395_v3  ;;  %v255_v18 = vld [vmem:[%s1446_s9 + $0x40] sm:$0xff]  ;;  %v402_v23 = vadd.f32 %v1457_v1, %v254_v17  ;;  %s2004_s10 = scalar_lea.hbm %s2060_s3, %s964_s23  ;;  %p1143_p5 = scmp.ne.s32.totalorder %s1998_s26, %s1142_s19 }
  0x74   : > { %v400_v15 = vadd.f32 %v1457_v1, %v252_v11  ;;  %v401_v16 = vadd.f32 %v1457_v1, %v253_v12  ;;  %v256_v19 = vld [vmem:[%s1446_s9 + $0x48] sm:$0xff]  ;;  %v546_v22 = vmul.f32 %v1459_v2, %v398_v9  ;;  %v257_v24 = vld [vmem:[%s1446_s9 + $0x50] sm:$0xff]  ;;  %v258_v25 = vld [vmem:[%s1446_s9 + $0x58] sm:$0xff]  ;;  %v547_v27 = vmul.f32 %v1459_v2, %v399_v14  ;;  %p2079_p10 = scmp.ne.s32.totalorder %s2070_s24, 0  ;;  %s1235_s20 = smov [#allocation8]  }
  0x75   : > { %v544_v20 = vmul.f32 %v1459_v2, %v396_v7  ;;  %v545_v21 = vmul.f32 %v1459_v2, %v397_v8  ;;  %v259_v26 = vld [vmem:[%s1446_s9 + $0x60] sm:$0xff]  ;;  %684 = vst [vmem:[%s1487_s21] sm:$0xff] %v543_v13  ;;  %v403_v30 = vadd.f32 %v1457_v1, %v255_v18  ;;  %v260_v31 = vld [vmem:[%s1446_s9 + $0x68] sm:$0xff]  ;;  %v261_v32 = vld [vmem:[%s1446_s9 + $0x70] sm:$0xff]  ;;  %v550_v34 = vmul.f32 %v1459_v2, %v402_v23  ;;  %s1146_s6 = sshll.u32 %s1235_s20, 4  ;;  %s1147_s6 = int_to_ptr.vmem [resolvable:$false] %s1146_s6 }
  0x76   : > { %v548_v28 = vmul.f32 %v1459_v2, %v400_v15  ;;  %v549_v29 = vmul.f32 %v1459_v2, %v401_v16  ;;  %v262_v33 = vld [vmem:[%s1446_s9 + $0x78] sm:$0xff]  ;;  %687 = vst [vmem:[%s1487_s21 + $0x18] sm:$0xff] %v546_v22  ;;  %v404_v35 = vadd.f32 %v1457_v1, %v256_v19  ;;  %v405_v36 = vadd.f32 %v1457_v1, %v257_v24  ;;  %v263_v38 = vld [vmem:[%s1446_s9 + $0x80] sm:$0xff]  ;;  %v264_v43 = vld [vmem:[%s1446_s9 + $0x88] sm:$0xff]  ;;  %p1144_p11 = pnand %p1143_p5, %p2079_p10  ;;  %s1148_s11 = scalar_lea.vmem %s1147_s6, 36096 }
  0x77   : > { %685 = vst [vmem:[%s1487_s21 + $0x8] sm:$0xff] %v544_v20  ;;  %686 = vst [vmem:[%s1487_s21 + $0x10] sm:$0xff] %v545_v21  ;;  %v406_v37 = vadd.f32 %v1457_v1, %v258_v25  ;;  %v551_v39 = vmul.f32 %v1459_v2, %v403_v30  ;;  %v407_v40 = vadd.f32 %v1457_v1, %v259_v26  ;;  %v265_v44 = vld [vmem:[%s1446_s9 + $0x90] sm:$0xff]  ;;  %v266_v45 = vld [vmem:[%s1446_s9 + $0x98] sm:$0xff]  ;;  %p1149_p0 = scmp.lt.s32.totalorder %s1998_s26, %s1147_s6  ;;  %p1150_p6 = scmp.lt.s32.totalorder %s1148_s11, %s1142_s19 }
  0x78   : > { %688 = vst [vmem:[%s1487_s21 + $0x20] sm:$0xff] %v547_v27  ;;  %689 = vst [vmem:[%s1487_s21 + $0x28] sm:$0xff] %v548_v28  ;;  %v408_v41 = vadd.f32 %v1457_v1, %v260_v31  ;;  %v409_v42 = vadd.f32 %v1457_v1, %v261_v32  ;;  %v552_v46 = vmul.f32 %v1459_v2, %v404_v35  ;;  %v267_v50 = vld [vmem:[%s1446_s9 + $0xa0] sm:$0xff]  ;;  %v268_v51 = vld [vmem:[%s1446_s9 + $0xa8] sm:$0xff]  ;;  %p1145_p1 = pneg %p1144_p11 }
  0x79   : > { %690 = vst [vmem:[%s1487_s21 + $0x30] sm:$0xff] %v549_v29  ;;  %691 = vst [vmem:[%s1487_s21 + $0x38] sm:$0xff] %v550_v34  ;;  %v553_v47 = vmul.f32 %v1459_v2, %v405_v36  ;;  %v554_v48 = vmul.f32 %v1459_v2, %v406_v37  ;;  %v410_v49 = vadd.f32 %v1457_v1, %v262_v33  ;;  %v269_v52 = vld [vmem:[%s1446_s9 + $0xb0] sm:$0xff]  ;;  %v270_v57 = vld [vmem:[%s1446_s9 + $0xb8] sm:$0xff]  ;;  %p1151_p9 = por %p1150_p6, %p1149_p0 }
  0x7a   : > { %692 = vst [vmem:[%s1487_s21 + $0x40] sm:$0xff] %v551_v39  ;;  %v555_v53 = vmul.f32 %v1459_v2, %v407_v40  ;;  %v556_v54 = vmul.f32 %v1459_v2, %v408_v41  ;;  %v557_v55 = vmul.f32 %v1459_v2, %v409_v42  ;;  %v411_v56 = vadd.f32 %v1457_v1, %v263_v38  ;;  %v271_v62 = vld [vmem:[%s1446_s9 + $0xc0] sm:$0xff]  ;;  %v272_v5 = vld [vmem:[%s1446_s9 + $0xc8] sm:$0xff]  ;;  %v273_v6 = vld [vmem:[%s1446_s9 + $0xd0] sm:$0xff] }
  0x7b   : > { %693 = vst [vmem:[%s1487_s21 + $0x48] sm:$0xff] %v552_v46  ;;  %694 = vst [vmem:[%s1487_s21 + $0x50] sm:$0xff] %v553_v47  ;;  %v558_v58 = vmul.f32 %v1459_v2, %v410_v49  ;;  %v412_v59 = vadd.f32 %v1457_v1, %v264_v43  ;;  %v413_v60 = vadd.f32 %v1457_v1, %v265_v44  ;;  %v274_v7 = vld [vmem:[%s1446_s9 + $0xd8] sm:$0xff]  ;;  %v275_v12 = vld [vmem:[%s1446_s9 + $0xe0] sm:$0xff]  ;;  %p1152_p2 = pnand %p1151_p9, %p1145_p1 }
  0x7c   : > { %695 = vst [vmem:[%s1487_s21 + $0x58] sm:$0xff] %v554_v48  ;;  %v414_v61 = vadd.f32 %v1457_v1, %v266_v45  ;;  %696 = vst [vmem:[%s1487_s21 + $0x60] sm:$0xff] %v555_v53  ;;  %v559_v63 = vmul.f32 %v1459_v2, %v411_v56  ;;  %v415_v0 = vadd.f32 %v1457_v1, %v267_v50  ;;  %v276_v13 = vld [vmem:[%s1446_s9 + $0xe8] sm:$0xff]  ;;  %v277_v14 = vld [vmem:[%s1446_s9 + $0xf0] sm:$0xff] }
  0x7d   : > { %697 = vst [vmem:[%s1487_s21 + $0x68] sm:$0xff] %v556_v54  ;;  %698 = vst [vmem:[%s1487_s21 + $0x70] sm:$0xff] %v557_v55  ;;  %v416_v3 = vadd.f32 %v1457_v1, %v268_v51  ;;  %v417_v4 = vadd.f32 %v1457_v1, %v269_v52  ;;  %v560_v8 = vmul.f32 %v1459_v2, %v412_v59  ;;  %v278_v19 = vld [vmem:[%s1446_s9 + $0xf8] sm:$0xff]  ;;  %v279_v24 = vld [vmem:[%s1446_s9 + $0x100] sm:$0xff] }
  0x7e   : > { %699 = vst [vmem:[%s1487_s21 + $0x78] sm:$0xff] %v558_v58  ;;  %v561_v9 = vmul.f32 %v1459_v2, %v413_v60  ;;  %v562_v10 = vmul.f32 %v1459_v2, %v414_v61  ;;  %v418_v11 = vadd.f32 %v1457_v1, %v270_v57  ;;  %700 = vst [vmem:[%s1487_s21 + $0x80] sm:$0xff] %v559_v63  ;;  %v280_v29 = vld [vmem:[%s1446_s9 + $0x108] sm:$0xff]  ;;  %v281_v30 = vld [vmem:[%s1446_s9 + $0x110] sm:$0xff] }
  0x7f   : > { %v563_v15 = vmul.f32 %v1459_v2, %v415_v0  ;;  %v564_v16 = vmul.f32 %v1459_v2, %v416_v3  ;;  %v565_v17 = vmul.f32 %v1459_v2, %v417_v4  ;;  %v419_v18 = vadd.f32 %v1457_v1, %v271_v62  ;;  %701 = vst [vmem:[%s1487_s21 + $0x88] sm:$0xff] %v560_v8  ;;  %v282_v31 = vld [vmem:[%s1446_s9 + $0x118] sm:$0xff]  ;;  %v283_v36 = vld [vmem:[%s1446_s9 + $0x120] sm:$0xff]  ;;  %v284_v37 = vld [vmem:[%s1446_s9 + $0x128] sm:$0xff] }
  0x80   : > { %702 = vst [vmem:[%s1487_s21 + $0x90] sm:$0xff] %v561_v9  ;;  %703 = vst [vmem:[%s1487_s21 + $0x98] sm:$0xff] %v562_v10  ;;  %v566_v20 = vmul.f32 %v1459_v2, %v418_v11  ;;  %v420_v21 = vadd.f32 %v1457_v1, %v272_v5  ;;  %v421_v22 = vadd.f32 %v1457_v1, %v273_v6  ;;  %v285_v38 = vld [vmem:[%s1446_s9 + $0x130] sm:$0xff]  ;;  %v286_v43 = vld [vmem:[%s1446_s9 + $0x138] sm:$0xff] }
  0x81   : > { %v422_v23 = vadd.f32 %v1457_v1, %v274_v7  ;;  %704 = vst [vmem:[%s1487_s21 + $0xa0] sm:$0xff] %v563_v15  ;;  %705 = vst [vmem:[%s1487_s21 + $0xa8] sm:$0xff] %v564_v16  ;;  %v567_v25 = vmul.f32 %v1459_v2, %v419_v18  ;;  %v423_v26 = vadd.f32 %v1457_v1, %v275_v12  ;;  %v287_v48 = vld [vmem:[%s1446_s9 + $0x140] sm:$0xff]  ;;  %v288_v53 = vld [vmem:[%s1446_s9 + $0x148] sm:$0xff] }
  0x82   : > { %706 = vst [vmem:[%s1487_s21 + $0xb0] sm:$0xff] %v565_v17  ;;  %v424_v27 = vadd.f32 %v1457_v1, %v276_v13  ;;  %v425_v28 = vadd.f32 %v1457_v1, %v277_v14  ;;  %707 = vst [vmem:[%s1487_s21 + $0xb8] sm:$0xff] %v566_v20  ;;  %v568_v32 = vmul.f32 %v1459_v2, %v420_v21  ;;  %v289_v54 = vld [vmem:[%s1446_s9 + $0x150] sm:$0xff]  ;;  %v290_v55 = vld [vmem:[%s1446_s9 + $0x158] sm:$0xff] }
  0x83   : > { %v569_v33 = vmul.f32 %v1459_v2, %v421_v22  ;;  %v570_v34 = vmul.f32 %v1459_v2, %v422_v23  ;;  %v426_v35 = vadd.f32 %v1457_v1, %v278_v19  ;;  %708 = vst [vmem:[%s1487_s21 + $0xc0] sm:$0xff] %v567_v25  ;;  %v571_v39 = vmul.f32 %v1459_v2, %v423_v26  ;;  %v291_v60 = vld [vmem:[%s1446_s9 + $0x160] sm:$0xff]  ;;  %v292_v61 = vld [vmem:[%s1446_s9 + $0x168] sm:$0xff]  ;;  %v293_v62 = vld [vmem:[%s1446_s9 + $0x170] sm:$0xff] }
  0x84   : > { %v572_v40 = vmul.f32 %v1459_v2, %v424_v27  ;;  %v573_v41 = vmul.f32 %v1459_v2, %v425_v28  ;;  %v427_v42 = vadd.f32 %v1457_v1, %v279_v24  ;;  %709 = vst [vmem:[%s1487_s21 + $0xc8] sm:$0xff] %v568_v32  ;;  %v428_v45 = vadd.f32 %v1457_v1, %v280_v29  ;;  %v294_v5 = vld [vmem:[%s1446_s9 + $0x178] sm:$0xff]  ;;  %v295_v10 = vld [vmem:[%s1446_s9 + $0x180] sm:$0xff]  ;;  %v296_v15 = vld [vmem:[%s1446_s9 + $0x188] sm:$0xff] }
  0x85   : > { %710 = vst [vmem:[%s1487_s21 + $0xd0] sm:$0xff] %v569_v33  ;;  %711 = vst [vmem:[%s1487_s21 + $0xd8] sm:$0xff] %v570_v34  ;;  %v574_v44 = vmul.f32 %v1459_v2, %v426_v35  ;;  %v429_v46 = vadd.f32 %v1457_v1, %v281_v30  ;;  %v430_v47 = vadd.f32 %v1457_v1, %v282_v31  ;;  %v297_v16 = vld [vmem:[%s1446_s9 + $0x190] sm:$0xff]  ;;  %v298_v17 = vld [vmem:[%s1446_s9 + $0x198] sm:$0xff] }
  0x86   : > { %712 = vst [vmem:[%s1487_s21 + $0xe0] sm:$0xff] %v571_v39  ;;  %713 = vst [vmem:[%s1487_s21 + $0xe8] sm:$0xff] %v572_v40  ;;  %v575_v49 = vmul.f32 %v1459_v2, %v427_v42  ;;  %v431_v50 = vadd.f32 %v1457_v1, %v283_v36  ;;  %v432_v51 = vadd.f32 %v1457_v1, %v284_v37  ;;  %v299_v22 = vld [vmem:[%s1446_s9 + $0x1a0] sm:$0xff]  ;;  %v300_v23 = vld [vmem:[%s1446_s9 + $0x1a8] sm:$0xff] }
  0x87   : > { %714 = vst [vmem:[%s1487_s21 + $0xf0] sm:$0xff] %v573_v41  ;;  %v433_v52 = vadd.f32 %v1457_v1, %v285_v38  ;;  %715 = vst [vmem:[%s1487_s21 + $0xf8] sm:$0xff] %v574_v44  ;;  %v576_v56 = vmul.f32 %v1459_v2, %v428_v45  ;;  %v577_v57 = vmul.f32 %v1459_v2, %v429_v46  ;;  %v301_v24 = vld [vmem:[%s1446_s9 + $0x1b0] sm:$0xff]  ;;  %v302_v29 = vld [vmem:[%s1446_s9 + $0x1b8] sm:$0xff] }
  0x88   : > { %v578_v58 = vmul.f32 %v1459_v2, %v430_v47  ;;  %v434_v59 = vadd.f32 %v1457_v1, %v286_v43  ;;  %716 = vst [vmem:[%s1487_s21 + $0x100] sm:$0xff] %v575_v49  ;;  %v579_v63 = vmul.f32 %v1459_v2, %v431_v50  ;;  %v580_v0 = vmul.f32 %v1459_v2, %v432_v51  ;;  %v303_v34 = vld [vmem:[%s1446_s9 + $0x1c0] sm:$0xff]  ;;  %v304_v39 = vld [vmem:[%s1446_s9 + $0x1c8] sm:$0xff]  ;;  %v305_v40 = vld [vmem:[%s1446_s9 + $0x1d0] sm:$0xff] }
  0x89   : > { %v581_v3 = vmul.f32 %v1459_v2, %v433_v52  ;;  %v435_v4 = vadd.f32 %v1457_v1, %v287_v48  ;;  %717 = vst [vmem:[%s1487_s21 + $0x108] sm:$0xff] %v576_v56  ;;  %718 = vst [vmem:[%s1487_s21 + $0x110] sm:$0xff] %v577_v57  ;;  %v436_v7 = vadd.f32 %v1457_v1, %v288_v53  ;;  %v306_v41 = vld [vmem:[%s1446_s9 + $0x1d8] sm:$0xff]  ;;  %v307_v46 = vld [vmem:[%s1446_s9 + $0x1e0] sm:$0xff] }
  0x8a   : > { %719 = vst [vmem:[%s1487_s21 + $0x118] sm:$0xff] %v578_v58  ;;  %v582_v6 = vmul.f32 %v1459_v2, %v434_v59  ;;  %v437_v8 = vadd.f32 %v1457_v1, %v289_v54  ;;  %v438_v9 = vadd.f32 %v1457_v1, %v290_v55  ;;  %720 = vst [vmem:[%s1487_s21 + $0x120] sm:$0xff] %v579_v63  ;;  %v308_v47 = vld [vmem:[%s1446_s9 + $0x1e8] sm:$0xff]  ;;  %v309_v48 = vld [vmem:[%s1446_s9 + $0x1f0] sm:$0xff] }
  0x8b   : > { %721 = vst [vmem:[%s1487_s21 + $0x128] sm:$0xff] %v580_v0  ;;  %722 = vst [vmem:[%s1487_s21 + $0x130] sm:$0xff] %v581_v3  ;;  %v583_v11 = vmul.f32 %v1459_v2, %v435_v4  ;;  %v439_v12 = vadd.f32 %v1457_v1, %v291_v60  ;;  %v440_v13 = vadd.f32 %v1457_v1, %v292_v61  ;;  %v310_v53 = vld [vmem:[%s1446_s9 + $0x1f8] sm:$0xff]  ;;  %v311_v58 = vld [vmem:[%s1446_s9 + $0x200] sm:$0xff] }
  0x8c   : > { %v441_v14 = vadd.f32 %v1457_v1, %v293_v62  ;;  %723 = vst [vmem:[%s1487_s21 + $0x138] sm:$0xff] %v582_v6  ;;  %v584_v18 = vmul.f32 %v1459_v2, %v436_v7  ;;  %v585_v19 = vmul.f32 %v1459_v2, %v437_v8  ;;  %v586_v20 = vmul.f32 %v1459_v2, %v438_v9  ;;  %v312_v63 = vld [vmem:[%s1446_s9 + $0x208] sm:$0xff]  ;;  %v313_v0 = vld [vmem:[%s1446_s9 + $0x210] sm:$0xff]  ;;  %v314_v3 = vld [vmem:[%s1446_s9 + $0x218] sm:$0xff] }
  0x8d   : > { %v442_v21 = vadd.f32 %v1457_v1, %v294_v5  ;;  %724 = vst [vmem:[%s1487_s21 + $0x140] sm:$0xff] %v583_v11  ;;  %v587_v25 = vmul.f32 %v1459_v2, %v439_v12  ;;  %v588_v26 = vmul.f32 %v1459_v2, %v440_v13  ;;  %v443_v28 = vadd.f32 %v1457_v1, %v295_v10  ;;  %v315_v8 = vld [vmem:[%s1446_s9 + $0x220] sm:$0xff]  ;;  %v316_v9 = vld [vmem:[%s1446_s9 + $0x228] sm:$0xff]  ;;  %v317_v10 = vld [vmem:[%s1446_s9 + $0x230] sm:$0xff] }
  0x8e   : > { %v589_v27 = vmul.f32 %v1459_v2, %v441_v14  ;;  %725 = vst [vmem:[%s1487_s21 + $0x148] sm:$0xff] %v584_v18  ;;  %726 = vst [vmem:[%s1487_s21 + $0x150] sm:$0xff] %v585_v19  ;;  %v444_v31 = vadd.f32 %v1457_v1, %v296_v15  ;;  %v445_v32 = vadd.f32 %v1457_v1, %v297_v16  ;;  %v318_v15 = vld [vmem:[%s1446_s9 + $0x238] sm:$0xff] }
  0x8f   : > { %727 = vst [vmem:[%s1487_s21 + $0x158] sm:$0xff] %v586_v20  ;;  %v590_v30 = vmul.f32 %v1459_v2, %v442_v21  ;;  %v446_v33 = vadd.f32 %v1457_v1, %v298_v17  ;;  %728 = vst [vmem:[%s1487_s21 + $0x160] sm:$0xff] %v587_v25  ;;  %v591_v35 = vmul.f32 %v1459_v2, %v443_v28  ;;  %v319_v20 = vld [vmem:[%s1446_s9 + $0x240] sm:$0xff]  ;;  %v320_v25 = vld [vmem:[%s1446_s9 + $0x248] sm:$0xff] }
  0x90   : > { %729 = vst [vmem:[%s1487_s21 + $0x168] sm:$0xff] %v588_v26  ;;  %730 = vst [vmem:[%s1487_s21 + $0x170] sm:$0xff] %v589_v27  ;;  %v447_v36 = vadd.f32 %v1457_v1, %v299_v22  ;;  %v448_v37 = vadd.f32 %v1457_v1, %v300_v23  ;;  %v449_v38 = vadd.f32 %v1457_v1, %v301_v24  ;;  %v321_v26 = vld [vmem:[%s1446_s9 + $0x250] sm:$0xff]  ;;  %v322_v27 = vld [vmem:[%s1446_s9 + $0x258] sm:$0xff] }
  0x91   : > { %731 = vst [vmem:[%s1487_s21 + $0x178] sm:$0xff] %v590_v30  ;;  %v592_v42 = vmul.f32 %v1459_v2, %v444_v31  ;;  %v593_v43 = vmul.f32 %v1459_v2, %v445_v32  ;;  %v594_v44 = vmul.f32 %v1459_v2, %v446_v33  ;;  %v450_v45 = vadd.f32 %v1457_v1, %v302_v29  ;;  %v323_v32 = vld [vmem:[%s1446_s9 + $0x260] sm:$0xff]  ;;  %v324_v33 = vld [vmem:[%s1446_s9 + $0x268] sm:$0xff] }
  0x92   : > { %732 = vst [vmem:[%s1487_s21 + $0x180] sm:$0xff] %v591_v35  ;;  %v595_v49 = vmul.f32 %v1459_v2, %v447_v36  ;;  %v596_v50 = vmul.f32 %v1459_v2, %v448_v37  ;;  %v597_v51 = vmul.f32 %v1459_v2, %v449_v38  ;;  %v451_v52 = vadd.f32 %v1457_v1, %v303_v34  ;;  %v325_v34 = vld [vmem:[%s1446_s9 + $0x270] sm:$0xff] }
  0x93   : > { %733 = vst [vmem:[%s1487_s21 + $0x188] sm:$0xff] %v592_v42  ;;  %734 = vst [vmem:[%s1487_s21 + $0x190] sm:$0xff] %v593_v43  ;;  %v598_v54 = vmul.f32 %v1459_v2, %v450_v45  ;;  %v452_v55 = vadd.f32 %v1457_v1, %v304_v39  ;;  %v453_v56 = vadd.f32 %v1457_v1, %v305_v40  ;;  %v326_v39 = vld [vmem:[%s1446_s9 + $0x278] sm:$0xff] }
  0x94   : > { %735 = vst [vmem:[%s1487_s21 + $0x198] sm:$0xff] %v594_v44  ;;  %v454_v57 = vadd.f32 %v1457_v1, %v306_v41  ;;  %736 = vst [vmem:[%s1487_s21 + $0x1a0] sm:$0xff] %v595_v49  ;;  %v599_v59 = vmul.f32 %v1459_v2, %v451_v52  ;;  %v455_v60 = vadd.f32 %v1457_v1, %v307_v46  ;;  %v327_v44 = vld [vmem:[%s1446_s9 + $0x280] sm:$0xff]  ;;  %v328_v49 = vld [vmem:[%s1446_s9 + $0x288] sm:$0xff] }
  0x95   : > { %737 = vst [vmem:[%s1487_s21 + $0x1a8] sm:$0xff] %v596_v50  ;;  %738 = vst [vmem:[%s1487_s21 + $0x1b0] sm:$0xff] %v597_v51  ;;  %v456_v61 = vadd.f32 %v1457_v1, %v308_v47  ;;  %v457_v62 = vadd.f32 %v1457_v1, %v309_v48  ;;  %v600_v4 = vmul.f32 %v1459_v2, %v452_v55  ;;  %v329_v50 = vld [vmem:[%s1446_s9 + $0x290] sm:$0xff]  ;;  %v330_v51 = vld [vmem:[%s1446_s9 + $0x298] sm:$0xff] }
  0x96   : > { %739 = vst [vmem:[%s1487_s21 + $0x1b8] sm:$0xff] %v598_v54  ;;  %v601_v5 = vmul.f32 %v1459_v2, %v453_v56  ;;  %v602_v6 = vmul.f32 %v1459_v2, %v454_v57  ;;  %v458_v7 = vadd.f32 %v1457_v1, %v310_v53  ;;  %740 = vst [vmem:[%s1487_s21 + $0x1c0] sm:$0xff] %v599_v59  ;;  %v331_v56 = vld [vmem:[%s1446_s9 + $0x2a0] sm:$0xff]  ;;  %v332_v57 = vld [vmem:[%s1446_s9 + $0x2a8] sm:$0xff] }
  0x97   : > { %v603_v11 = vmul.f32 %v1459_v2, %v455_v60  ;;  %v604_v12 = vmul.f32 %v1459_v2, %v456_v61  ;;  %v605_v13 = vmul.f32 %v1459_v2, %v457_v62  ;;  %v459_v14 = vadd.f32 %v1457_v1, %v311_v58  ;;  %741 = vst [vmem:[%s1487_s21 + $0x1c8] sm:$0xff] %v600_v4  ;;  %v333_v58 = vld [vmem:[%s1446_s9 + $0x2b0] sm:$0xff] }
  0x98   : > { %742 = vst [vmem:[%s1487_s21 + $0x1d0] sm:$0xff] %v601_v5  ;;  %743 = vst [vmem:[%s1487_s21 + $0x1d8] sm:$0xff] %v602_v6  ;;  %v606_v16 = vmul.f32 %v1459_v2, %v458_v7  ;;  %v460_v17 = vadd.f32 %v1457_v1, %v312_v63  ;;  %v461_v18 = vadd.f32 %v1457_v1, %v313_v0  ;;  %v334_v63 = vld [vmem:[%s1446_s9 + $0x2b8] sm:$0xff]  ;;  %v335_v6 = vld [vmem:[%s1446_s9 + $0x2c0] sm:$0xff] }
  0x99   : > { %v462_v19 = vadd.f32 %v1457_v1, %v314_v3  ;;  %744 = vst [vmem:[%s1487_s21 + $0x1e0] sm:$0xff] %v603_v11  ;;  %745 = vst [vmem:[%s1487_s21 + $0x1e8] sm:$0xff] %v604_v12  ;;  %v607_v21 = vmul.f32 %v1459_v2, %v459_v14  ;;  %v463_v22 = vadd.f32 %v1457_v1, %v315_v8  ;;  %v336_v11 = vld [vmem:[%s1446_s9 + $0x2c8] sm:$0xff]  ;;  %v337_v12 = vld [vmem:[%s1446_s9 + $0x2d0] sm:$0xff] }
  0x9a   : > { %746 = vst [vmem:[%s1487_s21 + $0x1f0] sm:$0xff] %v605_v13  ;;  %v464_v23 = vadd.f32 %v1457_v1, %v316_v9  ;;  %v465_v24 = vadd.f32 %v1457_v1, %v317_v10  ;;  %747 = vst [vmem:[%s1487_s21 + $0x1f8] sm:$0xff] %v606_v16  ;;  %v608_v28 = vmul.f32 %v1459_v2, %v460_v17  ;;  %v338_v13 = vld [vmem:[%s1446_s9 + $0x2d8] sm:$0xff] }
  0x9b   : > { %v609_v29 = vmul.f32 %v1459_v2, %v461_v18  ;;  %v610_v30 = vmul.f32 %v1459_v2, %v462_v19  ;;  %v466_v31 = vadd.f32 %v1457_v1, %v318_v15  ;;  %748 = vst [vmem:[%s1487_s21 + $0x200] sm:$0xff] %v607_v21  ;;  %v611_v35 = vmul.f32 %v1459_v2, %v463_v22  ;;  %v339_v18 = vld [vmem:[%s1446_s9 + $0x2e0] sm:$0xff]  ;;  %v340_v19 = vld [vmem:[%s1446_s9 + $0x2e8] sm:$0xff] }
  0x9c   : > { %v612_v36 = vmul.f32 %v1459_v2, %v464_v23  ;;  %v613_v37 = vmul.f32 %v1459_v2, %v465_v24  ;;  %v467_v38 = vadd.f32 %v1457_v1, %v319_v20  ;;  %749 = vst [vmem:[%s1487_s21 + $0x208] sm:$0xff] %v608_v28  ;;  %v468_v41 = vadd.f32 %v1457_v1, %v320_v25  ;;  %v341_v20 = vld [vmem:[%s1446_s9 + $0x2f0] sm:$0xff]  ;;  %v342_v25 = vld [vmem:[%s1446_s9 + $0x2f8] sm:$0xff] }
  0x9d   : > { %750 = vst [vmem:[%s1487_s21 + $0x210] sm:$0xff] %v609_v29  ;;  %751 = vst [vmem:[%s1487_s21 + $0x218] sm:$0xff] %v610_v30  ;;  %v614_v40 = vmul.f32 %v1459_v2, %v466_v31  ;;  %v469_v42 = vadd.f32 %v1457_v1, %v321_v26  ;;  %v470_v43 = vadd.f32 %v1457_v1, %v322_v27  ;;  %v343_v30 = vld [vmem:[%s1446_s9 + $0x300] sm:$0xff] }
  0x9e   : > { %752 = vst [vmem:[%s1487_s21 + $0x220] sm:$0xff] %v611_v35  ;;  %753 = vst [vmem:[%s1487_s21 + $0x228] sm:$0xff] %v612_v36  ;;  %v615_v45 = vmul.f32 %v1459_v2, %v467_v38  ;;  %v471_v46 = vadd.f32 %v1457_v1, %v323_v32  ;;  %v472_v47 = vadd.f32 %v1457_v1, %v324_v33  ;;  %v344_v35 = vld [vmem:[%s1446_s9 + $0x308] sm:$0xff]  ;;  %v345_v36 = vld [vmem:[%s1446_s9 + $0x310] sm:$0xff] }
  0x9f   : > { %754 = vst [vmem:[%s1487_s21 + $0x230] sm:$0xff] %v613_v37  ;;  %v473_v48 = vadd.f32 %v1457_v1, %v325_v34  ;;  %755 = vst [vmem:[%s1487_s21 + $0x238] sm:$0xff] %v614_v40  ;;  %v616_v52 = vmul.f32 %v1459_v2, %v468_v41  ;;  %v617_v53 = vmul.f32 %v1459_v2, %v469_v42  ;;  %v346_v37 = vld [vmem:[%s1446_s9 + $0x318] sm:$0xff]  ;;  %v347_v42 = vld [vmem:[%s1446_s9 + $0x320] sm:$0xff] }
  0xa0   : > { %v618_v54 = vmul.f32 %v1459_v2, %v470_v43  ;;  %v474_v55 = vadd.f32 %v1457_v1, %v326_v39  ;;  %756 = vst [vmem:[%s1487_s21 + $0x240] sm:$0xff] %v615_v45  ;;  %v619_v59 = vmul.f32 %v1459_v2, %v471_v46  ;;  %v620_v60 = vmul.f32 %v1459_v2, %v472_v47  ;;  %v348_v43 = vld [vmem:[%s1446_s9 + $0x328] sm:$0xff] }
  0xa1   : > { %v621_v61 = vmul.f32 %v1459_v2, %v473_v48  ;;  %v475_v62 = vadd.f32 %v1457_v1, %v327_v44  ;;  %757 = vst [vmem:[%s1487_s21 + $0x248] sm:$0xff] %v616_v52  ;;  %758 = vst [vmem:[%s1487_s21 + $0x250] sm:$0xff] %v617_v53  ;;  %v476_v3 = vadd.f32 %v1457_v1, %v328_v49  ;;  %v349_v44 = vld [vmem:[%s1446_s9 + $0x330] sm:$0xff]  ;;  %v350_v49 = vld [vmem:[%s1446_s9 + $0x338] sm:$0xff] }
  0xa2   : > { %759 = vst [vmem:[%s1487_s21 + $0x258] sm:$0xff] %v618_v54  ;;  %v622_v0 = vmul.f32 %v1459_v2, %v474_v55  ;;  %v477_v4 = vadd.f32 %v1457_v1, %v329_v50  ;;  %v478_v5 = vadd.f32 %v1457_v1, %v330_v51  ;;  %760 = vst [vmem:[%s1487_s21 + $0x260] sm:$0xff] %v619_v59  ;;  %v351_v54 = vld [vmem:[%s1446_s9 + $0x340] sm:$0xff]  ;;  %v352_v59 = vld [vmem:[%s1446_s9 + $0x348] sm:$0xff] }
  0xa3   : > { %761 = vst [vmem:[%s1487_s21 + $0x268] sm:$0xff] %v620_v60  ;;  %762 = vst [vmem:[%s1487_s21 + $0x270] sm:$0xff] %v621_v61  ;;  %v623_v7 = vmul.f32 %v1459_v2, %v475_v62  ;;  %v479_v8 = vadd.f32 %v1457_v1, %v331_v56  ;;  %v480_v9 = vadd.f32 %v1457_v1, %v332_v57  ;;  %v353_v60 = vld [vmem:[%s1446_s9 + $0x350] sm:$0xff]  ;;  %v354_v61 = vld [vmem:[%s1446_s9 + $0x358] sm:$0xff] }
  0xa4   : > { %v481_v10 = vadd.f32 %v1457_v1, %v333_v58  ;;  %763 = vst [vmem:[%s1487_s21 + $0x278] sm:$0xff] %v622_v0  ;;  %v624_v14 = vmul.f32 %v1459_v2, %v476_v3  ;;  %v625_v15 = vmul.f32 %v1459_v2, %v477_v4  ;;  %v626_v16 = vmul.f32 %v1459_v2, %v478_v5  ;;  %v355_v4 = vld [vmem:[%s1446_s9 + $0x360] sm:$0xff]  ;;  %v356_v5 = vld [vmem:[%s1446_s9 + $0x368] sm:$0xff] }
  0xa5   : > { %v482_v17 = vadd.f32 %v1457_v1, %v334_v63  ;;  %764 = vst [vmem:[%s1487_s21 + $0x280] sm:$0xff] %v623_v7  ;;  %v627_v21 = vmul.f32 %v1459_v2, %v479_v8  ;;  %v628_v22 = vmul.f32 %v1459_v2, %v480_v9  ;;  %v483_v24 = vadd.f32 %v1457_v1, %v335_v6  ;;  %v357_v6 = vld [vmem:[%s1446_s9 + $0x370] sm:$0xff] }
  0xa6   : > { %v629_v23 = vmul.f32 %v1459_v2, %v481_v10  ;;  %765 = vst [vmem:[%s1487_s21 + $0x288] sm:$0xff] %v624_v14  ;;  %766 = vst [vmem:[%s1487_s21 + $0x290] sm:$0xff] %v625_v15  ;;  %v484_v27 = vadd.f32 %v1457_v1, %v336_v11  ;;  %v485_v28 = vadd.f32 %v1457_v1, %v337_v12  ;;  %v358_v11 = vld [vmem:[%s1446_s9 + $0x378] sm:$0xff] }
  0xa7   : > { %767 = vst [vmem:[%s1487_s21 + $0x298] sm:$0xff] %v626_v16  ;;  %v630_v26 = vmul.f32 %v1459_v2, %v482_v17  ;;  %v486_v29 = vadd.f32 %v1457_v1, %v338_v13  ;;  %768 = vst [vmem:[%s1487_s21 + $0x2a0] sm:$0xff] %v627_v21  ;;  %v631_v31 = vmul.f32 %v1459_v2, %v483_v24  ;;  %v359_v16 = vld [vmem:[%s1446_s9 + $0x380] sm:$0xff]  ;;  %v360_v21 = vld [vmem:[%s1446_s9 + $0x388] sm:$0xff] }
  0xa8   : > { %769 = vst [vmem:[%s1487_s21 + $0x2a8] sm:$0xff] %v628_v22  ;;  %770 = vst [vmem:[%s1487_s21 + $0x2b0] sm:$0xff] %v629_v23  ;;  %v487_v32 = vadd.f32 %v1457_v1, %v339_v18  ;;  %v488_v33 = vadd.f32 %v1457_v1, %v340_v19  ;;  %v489_v34 = vadd.f32 %v1457_v1, %v341_v20  ;;  %v361_v22 = vld [vmem:[%s1446_s9 + $0x390] sm:$0xff]  ;;  %v362_v23 = vld [vmem:[%s1446_s9 + $0x398] sm:$0xff] }
  0xa9   : > { %771 = vst [vmem:[%s1487_s21 + $0x2b8] sm:$0xff] %v630_v26  ;;  %v632_v38 = vmul.f32 %v1459_v2, %v484_v27  ;;  %v633_v39 = vmul.f32 %v1459_v2, %v485_v28  ;;  %v634_v40 = vmul.f32 %v1459_v2, %v486_v29  ;;  %v490_v41 = vadd.f32 %v1457_v1, %v342_v25  ;;  %v363_v28 = vld [vmem:[%s1446_s9 + $0x3a0] sm:$0xff]  ;;  %v364_v29 = vld [vmem:[%s1446_s9 + $0x3a8] sm:$0xff] }
  0xaa   : > { %772 = vst [vmem:[%s1487_s21 + $0x2c0] sm:$0xff] %v631_v31  ;;  %v635_v45 = vmul.f32 %v1459_v2, %v487_v32  ;;  %v636_v46 = vmul.f32 %v1459_v2, %v488_v33  ;;  %v637_v47 = vmul.f32 %v1459_v2, %v489_v34  ;;  %v491_v48 = vadd.f32 %v1457_v1, %v343_v30  ;;  %v365_v30 = vld [vmem:[%s1446_s9 + $0x3b0] sm:$0xff] }
  0xab   : > { %773 = vst [vmem:[%s1487_s21 + $0x2c8] sm:$0xff] %v632_v38  ;;  %774 = vst [vmem:[%s1487_s21 + $0x2d0] sm:$0xff] %v633_v39  ;;  %v638_v50 = vmul.f32 %v1459_v2, %v490_v41  ;;  %v492_v51 = vadd.f32 %v1457_v1, %v344_v35  ;;  %v493_v52 = vadd.f32 %v1457_v1, %v345_v36  ;;  %v366_v35 = vld [vmem:[%s1446_s9 + $0x3b8] sm:$0xff] }
  0xac   : > { %775 = vst [vmem:[%s1487_s21 + $0x2d8] sm:$0xff] %v634_v40  ;;  %v494_v53 = vadd.f32 %v1457_v1, %v346_v37  ;;  %776 = vst [vmem:[%s1487_s21 + $0x2e0] sm:$0xff] %v635_v45  ;;  %v639_v55 = vmul.f32 %v1459_v2, %v491_v48  ;;  %v495_v56 = vadd.f32 %v1457_v1, %v347_v42  ;;  %v367_v40 = vld [vmem:[%s1446_s9 + $0x3c0] sm:$0xff]  ;;  %v368_v45 = vld [vmem:[%s1446_s9 + $0x3c8] sm:$0xff] }
  0xad   : > { %777 = vst [vmem:[%s1487_s21 + $0x2e8] sm:$0xff] %v636_v46  ;;  %778 = vst [vmem:[%s1487_s21 + $0x2f0] sm:$0xff] %v637_v47  ;;  %v496_v57 = vadd.f32 %v1457_v1, %v348_v43  ;;  %v497_v58 = vadd.f32 %v1457_v1, %v349_v44  ;;  %v640_v62 = vmul.f32 %v1459_v2, %v492_v51  ;;  %v369_v46 = vld [vmem:[%s1446_s9 + $0x3d0] sm:$0xff]  ;;  %v370_v47 = vld [vmem:[%s1446_s9 + $0x3d8] sm:$0xff] }
  0xae   : > { %779 = vst [vmem:[%s1487_s21 + $0x2f8] sm:$0xff] %v638_v50  ;;  %v641_v63 = vmul.f32 %v1459_v2, %v493_v52  ;;  %v642_v0 = vmul.f32 %v1459_v2, %v494_v53  ;;  %v498_v3 = vadd.f32 %v1457_v1, %v350_v49  ;;  %780 = vst [vmem:[%s1487_s21 + $0x300] sm:$0xff] %v639_v55  ;;  %v371_v52 = vld [vmem:[%s1446_s9 + $0x3e0] sm:$0xff]  ;;  %v372_v53 = vld [vmem:[%s1446_s9 + $0x3e8] sm:$0xff] }
  0xaf   : > { %v643_v7 = vmul.f32 %v1459_v2, %v495_v56  ;;  %v644_v8 = vmul.f32 %v1459_v2, %v496_v57  ;;  %v645_v9 = vmul.f32 %v1459_v2, %v497_v58  ;;  %v499_v10 = vadd.f32 %v1457_v1, %v351_v54  ;;  %781 = vst [vmem:[%s1487_s21 + $0x308] sm:$0xff] %v640_v62  ;;  %v373_v54 = vld [vmem:[%s1446_s9 + $0x3f0] sm:$0xff] }
  0xb0   : > { %782 = vst [vmem:[%s1487_s21 + $0x310] sm:$0xff] %v641_v63  ;;  %783 = vst [vmem:[%s1487_s21 + $0x318] sm:$0xff] %v642_v0  ;;  %v646_v12 = vmul.f32 %v1459_v2, %v498_v3  ;;  %v500_v13 = vadd.f32 %v1457_v1, %v352_v59  ;;  %v501_v14 = vadd.f32 %v1457_v1, %v353_v60  ;;  %v374_v59 = vld [vmem:[%s1446_s9 + $0x3f8] sm:$0xff]  ;;  %v375_v0 = vld [vmem:[%s1446_s9 + $0x400] sm:$0xff] }
  0xb1   : > { %v502_v15 = vadd.f32 %v1457_v1, %v354_v61  ;;  %784 = vst [vmem:[%s1487_s21 + $0x320] sm:$0xff] %v643_v7  ;;  %785 = vst [vmem:[%s1487_s21 + $0x328] sm:$0xff] %v644_v8  ;;  %v647_v17 = vmul.f32 %v1459_v2, %v499_v10  ;;  %v503_v18 = vadd.f32 %v1457_v1, %v355_v4  ;;  %v376_v7 = vld [vmem:[%s1446_s9 + $0x408] sm:$0xff]  ;;  %v377_v8 = vld [vmem:[%s1446_s9 + $0x410] sm:$0xff] }
  0xb2   : > { %786 = vst [vmem:[%s1487_s21 + $0x330] sm:$0xff] %v645_v9  ;;  %v504_v19 = vadd.f32 %v1457_v1, %v356_v5  ;;  %v505_v20 = vadd.f32 %v1457_v1, %v357_v6  ;;  %787 = vst [vmem:[%s1487_s21 + $0x338] sm:$0xff] %v646_v12  ;;  %v648_v24 = vmul.f32 %v1459_v2, %v500_v13  ;;  %v378_v9 = vld [vmem:[%s1446_s9 + $0x418] sm:$0xff] }
  0xb3   : > { %v649_v25 = vmul.f32 %v1459_v2, %v501_v14  ;;  %v650_v26 = vmul.f32 %v1459_v2, %v502_v15  ;;  %v506_v27 = vadd.f32 %v1457_v1, %v358_v11  ;;  %788 = vst [vmem:[%s1487_s21 + $0x340] sm:$0xff] %v647_v17  ;;  %v651_v31 = vmul.f32 %v1459_v2, %v503_v18  ;;  %v379_v14 = vld [vmem:[%s1446_s9 + $0x420] sm:$0xff]  ;;  %v380_v15 = vld [vmem:[%s1446_s9 + $0x428] sm:$0xff] }
  0xb4   : > { %v652_v32 = vmul.f32 %v1459_v2, %v504_v19  ;;  %v653_v33 = vmul.f32 %v1459_v2, %v505_v20  ;;  %v507_v34 = vadd.f32 %v1457_v1, %v359_v16  ;;  %789 = vst [vmem:[%s1487_s21 + $0x348] sm:$0xff] %v648_v24  ;;  %v508_v37 = vadd.f32 %v1457_v1, %v360_v21  ;;  %v381_v16 = vld [vmem:[%s1446_s9 + $0x430] sm:$0xff] }
  0xb5   : > { %790 = vst [vmem:[%s1487_s21 + $0x350] sm:$0xff] %v649_v25  ;;  %791 = vst [vmem:[%s1487_s21 + $0x358] sm:$0xff] %v650_v26  ;;  %v654_v36 = vmul.f32 %v1459_v2, %v506_v27  ;;  %v509_v38 = vadd.f32 %v1457_v1, %v361_v22  ;;  %v510_v39 = vadd.f32 %v1457_v1, %v362_v23  ;;  %v1054_v20 = vld [vmem:[#allocation5] ss:$0 sm:$0xff]  ;;  %v382_v22 = vld [vmem:[%s1446_s9 + $0x438] sm:$0xff] }
  0xb6   : > { %792 = vst [vmem:[%s1487_s21 + $0x360] sm:$0xff] %v651_v31  ;;  %793 = vst [vmem:[%s1487_s21 + $0x368] sm:$0xff] %v652_v32  ;;  %v655_v41 = vmul.f32 %v1459_v2, %v507_v34  ;;  %v511_v42 = vadd.f32 %v1457_v1, %v363_v28  ;;  %v512_v43 = vadd.f32 %v1457_v1, %v364_v29  ;;  %v383_v27 = vld [vmem:[%s1446_s9 + $0x440] sm:$0xff]  ;;  %v384_v31 = vld [vmem:[%s1446_s9 + $0x448] sm:$0xff] }
  0xb7   : > { %794 = vst [vmem:[%s1487_s21 + $0x370] sm:$0xff] %v653_v33  ;;  %v513_v44 = vadd.f32 %v1457_v1, %v365_v30  ;;  %795 = vst [vmem:[%s1487_s21 + $0x378] sm:$0xff] %v654_v36  ;;  %v656_v48 = vmul.f32 %v1459_v2, %v508_v37  ;;  %v657_v49 = vmul.f32 %v1459_v2, %v509_v38  ;;  %v385_v32 = vld [vmem:[%s1446_s9 + $0x450] sm:$0xff]  ;;  %v386_v33 = vld [vmem:[%s1446_s9 + $0x458] sm:$0xff] }
  0xb8   : > { %v658_v50 = vmul.f32 %v1459_v2, %v510_v39  ;;  %v514_v51 = vadd.f32 %v1457_v1, %v366_v35  ;;  %796 = vst [vmem:[%s1487_s21 + $0x380] sm:$0xff] %v655_v41  ;;  %v659_v55 = vmul.f32 %v1459_v2, %v511_v42  ;;  %v660_v56 = vmul.f32 %v1459_v2, %v512_v43  ;;  %v387_v38 = vld [vmem:[%s1446_s9 + $0x460] sm:$0xff] }
  0xb9   : > { %v661_v57 = vmul.f32 %v1459_v2, %v513_v44  ;;  %v515_v58 = vadd.f32 %v1457_v1, %v367_v40  ;;  %797 = vst [vmem:[%s1487_s21 + $0x388] sm:$0xff] %v656_v48  ;;  %798 = vst [vmem:[%s1487_s21 + $0x390] sm:$0xff] %v657_v49  ;;  %v516_v61 = vadd.f32 %v1457_v1, %v368_v45 }
  0xba   : > { %799 = vst [vmem:[%s1487_s21 + $0x398] sm:$0xff] %v658_v50  ;;  %v662_v60 = vmul.f32 %v1459_v2, %v514_v51  ;;  %v517_v62 = vadd.f32 %v1457_v1, %v369_v46  ;;  %v518_v63 = vadd.f32 %v1457_v1, %v370_v47  ;;  %800 = vst [vmem:[%s1487_s21 + $0x3a0] sm:$0xff] %v659_v55 }
  0xbb   : > { %801 = vst [vmem:[%s1487_s21 + $0x3a8] sm:$0xff] %v660_v56  ;;  %802 = vst [vmem:[%s1487_s21 + $0x3b0] sm:$0xff] %v661_v57  ;;  %v663_v3 = vmul.f32 %v1459_v2, %v515_v58  ;;  %v519_v4 = vadd.f32 %v1457_v1, %v371_v52  ;;  %v520_v5 = vadd.f32 %v1457_v1, %v372_v53 }
  0xbc   : > { %v521_v6 = vadd.f32 %v1457_v1, %v373_v54  ;;  %803 = vst [vmem:[%s1487_s21 + $0x3b8] sm:$0xff] %v662_v60  ;;  %v664_v10 = vmul.f32 %v1459_v2, %v516_v61  ;;  %v665_v11 = vmul.f32 %v1459_v2, %v517_v62  ;;  %v666_v12 = vmul.f32 %v1459_v2, %v518_v63 }
  0xbd   : > { %v522_v13 = vadd.f32 %v1457_v1, %v374_v59  ;;  %804 = vst [vmem:[%s1487_s21 + $0x3c0] sm:$0xff] %v663_v3  ;;  %v667_v17 = vmul.f32 %v1459_v2, %v519_v4  ;;  %v668_v18 = vmul.f32 %v1459_v2, %v520_v5  ;;  %v523_v21 = vadd.f32 %v1054_v20, %v375_v0  ;;  %v1055_v1 = vld [vmem:[#allocation7] ss:$0 sm:$0xff] }
  0xbe   : > { %v669_v19 = vmul.f32 %v1459_v2, %v521_v6  ;;  %805 = vst [vmem:[%s1487_s21 + $0x3c8] sm:$0xff] %v664_v10  ;;  %806 = vst [vmem:[%s1487_s21 + $0x3d0] sm:$0xff] %v665_v11  ;;  %v524_v24 = vadd.f32 %v1054_v20, %v376_v7  ;;  %v525_v25 = vadd.f32 %v1054_v20, %v377_v8 }
  0xbf   : > { %807 = vst [vmem:[%s1487_s21 + $0x3d8] sm:$0xff] %v666_v12  ;;  %v670_v23 = vmul.f32 %v1055_v1, %v522_v13  ;;  %v526_v26 = vadd.f32 %v1054_v20, %v378_v9  ;;  %808 = vst [vmem:[%s1487_s21 + $0x3e0] sm:$0xff] %v667_v17  ;;  %v671_v2 = vmul.f32 %v1055_v1, %v523_v21 }
  0xc0   : > { %809 = vst [vmem:[%s1487_s21 + $0x3e8] sm:$0xff] %v668_v18  ;;  %810 = vst [vmem:[%s1487_s21 + $0x3f0] sm:$0xff] %v669_v19  ;;  %v527_v28 = vadd.f32 %v1054_v20, %v379_v14  ;;  %v528_v29 = vadd.f32 %v1054_v20, %v380_v15  ;;  %v529_v30 = vadd.f32 %v1054_v20, %v381_v16 }
  0xc1   : > { %811 = vst [vmem:[%s1487_s21 + $0x3f8] sm:$0xff] %v670_v23  ;;  %v672_v34 = vmul.f32 %v1055_v1, %v524_v24  ;;  %v673_v35 = vmul.f32 %v1055_v1, %v525_v25  ;;  %v674_v36 = vmul.f32 %v1055_v1, %v526_v26  ;;  %v530_v37 = vadd.f32 %v1054_v20, %v382_v22 }
  0xc2   : > { %812 = vst [vmem:[%s1487_s21 + $0x400] sm:$0xff] %v671_v2  ;;  %v675_v39 = vmul.f32 %v1055_v1, %v527_v28  ;;  %v676_v40 = vmul.f32 %v1055_v1, %v528_v29  ;;  %v677_v41 = vmul.f32 %v1055_v1, %v529_v30  ;;  %v531_v42 = vadd.f32 %v1054_v20, %v383_v27 }
  0xc3   : > { %813 = vst [vmem:[%s1487_s21 + $0x408] sm:$0xff] %v672_v34  ;;  %814 = vst [vmem:[%s1487_s21 + $0x410] sm:$0xff] %v673_v35  ;;  %v678_v43 = vmul.f32 %v1055_v1, %v530_v37  ;;  %v532_v44 = vadd.f32 %v1054_v20, %v384_v31  ;;  %v533_v45 = vadd.f32 %v1054_v20, %v385_v32 }
  0xc4   : > { %815 = vst [vmem:[%s1487_s21 + $0x418] sm:$0xff] %v674_v36  ;;  %v534_v46 = vadd.f32 %v1054_v20, %v386_v33  ;;  %816 = vst [vmem:[%s1487_s21 + $0x420] sm:$0xff] %v675_v39  ;;  %v679_v47 = vmul.f32 %v1055_v1, %v531_v42  ;;  %v535_v48 = vadd.f32 %v1054_v20, %v387_v38 }
  0xc5   : > { %817 = vst [vmem:[%s1487_s21 + $0x428] sm:$0xff] %v676_v40  ;;  %818 = vst [vmem:[%s1487_s21 + $0x430] sm:$0xff] %v677_v41  ;;  %v680_v49 = vmul.f32 %v1055_v1, %v532_v44  ;;  %v681_v50 = vmul.f32 %v1055_v1, %v533_v45 }
  0xc6   : > { %819 = vst [vmem:[%s1487_s21 + $0x438] sm:$0xff] %v678_v43  ;;  %v682_v51 = vmul.f32 %v1055_v1, %v534_v46  ;;  %820 = vst [vmem:[%s1487_s21 + $0x440] sm:$0xff] %v679_v47  ;;  %v683_v52 = vmul.f32 %v1055_v1, %v535_v48 }
  0xc7   : > { %821 = vst [vmem:[%s1487_s21 + $0x448] sm:$0xff] %v680_v49  ;;  %822 = vst [vmem:[%s1487_s21 + $0x450] sm:$0xff] %v681_v50 }
  0xc8   : > { %823 = vst [vmem:[%s1487_s21 + $0x458] sm:$0xff] %v682_v51  ;;  %824 = vst [vmem:[%s1487_s21 + $0x460] sm:$0xff] %v683_v52 }
  0xc9   : > { %1155 = shalt.err (!%p1152_p2)
}
  0xca   : > { %s1156_s18 = scalar_lea.hbm %s2004_s10, 18048  ;;  %s1160_s5 = scalar_lea.hbm %s2060_s3, 36096 }
  0xcb   : > { %p1157_p8 = scmp.ne.s32.totalorder %s2004_s10, %s1156_s18  ;;  %p1161_p7 = scmp.lt.u32.totalorder %s2004_s10, %s2060_s3 }
  0xcc   : > { %p1162_p12 = scmp.lt.u32.totalorder %s1160_s5, %s1156_s18  ;;  %p1164_p5 = scmp.lt.u32.totalorder %s1156_s18, %s2004_s10 }
  0xcd   : > { %p1158_p13 = pnand %p1157_p8, %p2079_p10 }
  0xce   : > { %p1163_p3 = por %p1162_p12, %p1161_p7 }
  0xcf   : > { %p1159_p4 = pneg %p1158_p13 }
  0xd0   : > { %p1165_p11 = por %p1164_p5, %p1163_p3 }
  0xd2   : > { %p1166_p1 = pnand %p1165_p11, %p1159_p4 }
  0xd4   : > { %1169 = shalt.err (!%p1166_p1)
}
  0xd5   : > { %s1236_s21 = smov 128   ;;  %s1237_s23 = smov 8  }
  0xd6   : > { %977 = dma.vmem_to_hbm [thread:$0]  (%p2079_p10), %s1998_s26, 18048, %s2004_s10, %s826_s28, %s1236_s21, %s1236_s21, %s1237_s23  }
  0xd7 PF: > { %s855_s15 = sand.u32 1, %s1208_s12   ;;  %p2080_p0 = scmp.ne.s32.totalorder %s2071_s25, 0 }
  0xd8   : > { %p2081_p6 = scmp.ge.s32.totalorder %s1228_s17, 2  ;;  %s856_s29 = scalar_lea.sflag [#allocation4], %s855_s15 }
  0xda   : > { %p991_p9 = pnand %p2081_p6, %p2080_p0 }
  0xdc   : > { %1203 = dma.done.wait (!%p991_p9), %s856_s29, 18048  }
  0xdd   : > { %1205 = vsyncadd (!%p991_p9), %s856_s29, 4294949248  ;;  %s20_s17 = sadd.s32 1, %s1228_s17   ;;  %s2082_s12 = smov %s1212_s13 }
  0xde   : > { %p17_p2 = scmp.ge.s32.totalorder %s20_s17, 4   ;;  %s2083_s13 = smov %s1216_s14 }
  0xdf   : > { %s2084_s14 = smov %s1407_s4  ;;  %s2085_s15 = smov %s1224_s16 }
  0xe0   : > { %s2086_s16 = smov %s2088_s30  ;;  %19 = sbr.rel (!%p17_p2) target bundleno = 7 (0x7), region = 87 }
  0xe7   :  { %861 = vsyncpa [#allocation3], 1 }
  0xe8   :  { %863 = vsyncpa [#allocation3 + $0x1], 1 }
  0xe9   :  { %864 = vsyncpa [#allocation6], 1 }
  0xea   :  { %865 = vsyncpa [#allocation4], 1 }
  0xeb   :  { %867 = vsyncpa [#allocation4 + $0x1], 1 }

</bundles_post_ra>
